<compile_context>
chip_gen: v7x
topology: tpu7x:2x2x1
jax: 0.10.0
libtpu: 0.0.40
codegen_flags: <defaults>
</compile_context>

<pallas_src>
import numpy as np
import jax
import jax.numpy as jnp
from jax.experimental import pallas as pl
from jax.experimental.pallas import tpu as pltpu


_MAX_LOGIT_SCALE = 100.0
_TILE_BUDGET_BYTES = 2 * 1024 * 1024   # per tile; x4 (double-buffered in+out) = ~8 MiB VMEM
_MAX_LANE_TILE = 2048                  # lane tile cap when N must be split (multiple of 128)
_MIN_SPLIT_BYTES = 1 * 1024 * 1024     # only force a multi-block grid for arrays >= 1 MiB
_TARGET_MIN_BLOCKS = 8                 # target grid blocks for megacore (v7x) balance


def _logit_scaling_kernel(scale_ref, x_ref, o_ref):
    # scale_ref: SMEM (1, 1) f32 holding the ALREADY exp'd + clipped scale.
    # x_ref / o_ref: VMEM tiles.  Pure elementwise scaling (HBM-bound; VPU work is
    # free filler under the DMA).  f32 multiply keeps v5e happy; downcast matches
    # PyTorch's promotion (0-dim f32 scale does not upcast a bf16 tensor).
    o_ref[...] = (scale_ref[0, 0] * x_ref[...]).astype(o_ref.dtype)


def _as_lane_dense_2d(x):
    """Reshape x to a 2-D, lane-dense layout (pure metadata reshape; op is elementwise)."""
    T = x.size
    N0 = x.shape[-1]
    # Natural layout is already lane-dense and wide enough: keep it.
    if x.ndim >= 2 and N0 % 128 == 0 and N0 >= 512:
        return x.reshape(-1, N0)
    # Otherwise look for a large multiple of 128 that divides the flat element count.
    start = min(_MAX_LANE_TILE, (T // 128) * 128)
    for lanes in range(start, 0, -128):
        if T % lanes == 0:
            return x.reshape(T // lanes, lanes)
    # Fallback: masked stores on the ragged last dim (no factorization exists).
    return x.reshape(-1, N0)


def _choose_tiles(M, N, itemsize):
    # Sublane packing: 8 rows (f32), 16 (bf16/f16), 32 (int8/fp8) per vreg.
    sublane = max(8, 32 // itemsize)

    # Prefer full-row tiles (one contiguous HBM DMA per tile); split N only if even a
    # minimal (sublane, N) slab exceeds the per-tile budget.  The ragged final column
    # tile is legal (pl.cdiv + Pallas masking), so no N % 128 requirement.
    slab_bytes = sublane * N * itemsize
    tn = N if slab_bytes <= _TILE_BUDGET_BYTES else _MAX_LANE_TILE

    rows_budget = _TILE_BUDGET_BYTES // max(1, tn * itemsize)
    rows_budget = max(sublane, (rows_budget // sublane) * sublane)
    rows_needed = pl.cdiv(M, sublane) * sublane            # cover M, rounded to sublane
    tm = min(rows_budget, rows_needed)

    # Megacore balance (v7x has 2 TensorCores): for arrays worth splitting, make sure
    # the ("parallel","parallel") grid has several blocks even if one tile would fit.
    total_bytes = M * N * itemsize
    if total_bytes >= _MIN_SPLIT_BYTES:
        n_blocks = pl.cdiv(M, tm) * pl.cdiv(N, tn)
        if n_blocks < _TARGET_MIN_BLOCKS:
            target_m = min(_TARGET_MIN_BLOCKS, pl.cdiv(M, sublane))
            tm_split = pl.cdiv(pl.cdiv(M, target_m), sublane) * sublane
            tm = max(sublane, min(tm, tm_split))
    return tm, tn


def learnable_logit_scaling(x, log_logit_scale, *, max_logit_scale=_MAX_LOGIT_SCALE):
    """out = clip(exp(log_logit_scale), max=max_logit_scale) * x  (arbitrary input shape)."""
    # Hoist the scalar exp + clip out of the kernel: one scalar XLA op, done once.
    scale = jnp.minimum(jnp.exp(jnp.asarray(log_logit_scale, jnp.float32)),
                        jnp.float32(max_logit_scale))

    # Degenerate inputs: no grid to build.
    if x.ndim == 0 or x.size == 0:
        return (scale * x.astype(jnp.float32)).astype(x.dtype)

    orig_shape = x.shape
    x2 = _as_lane_dense_2d(x)
    M, N = x2.shape
    tm, tn = _choose_tiles(M, N, x2.dtype.itemsize)
    grid = (pl.cdiv(M, tm), pl.cdiv(N, tn))

    out = pl.pallas_call(
        _logit_scaling_kernel,
        out_shape=jax.ShapeDtypeStruct((M, N), x2.dtype),
        grid_spec=pltpu.PrefetchScalarGridSpec(
            num_scalar_prefetch=0,
            grid=grid,
            in_specs=[
                pl.BlockSpec(memory_space=pltpu.SMEM),          # clipped scalar scale
                pl.BlockSpec((tm, tn), lambda i, j: (i, j)),    # x tile
            ],
            out_specs=pl.BlockSpec((tm, tn), lambda i, j: (i, j)),
        ),
        compiler_params=pltpu.CompilerParams(
            dimension_semantics=("parallel", "parallel"),
        ),
    )(scale.reshape(1, 1), x2)

    return out.reshape(orig_shape)


if __name__ == "__main__":
    # Deterministic parameter init matching the module's __init__ (learnable and
    # register_buffer paths share the exact same forward math, so one kernel covers both).
    logit_scale_init = 1.0 / 0.07
    log_logit_scale = jnp.float32(np.log(logit_scale_init))

    key = jax.random.PRNGKey(0)
    k1, k2 = jax.random.split(key)

    # Case 1: f32, ND, small last dim (32) -> lane-densified to (2, 2048).
    x = jax.random.normal(k1, (2, 4, 16, 32), dtype=jnp.float32)
    out = jax.block_until_ready(learnable_logit_scaling(x, log_logit_scale))
    ref = jnp.minimum(jnp.exp(log_logit_scale), 100.0) * x
    np.testing.assert_allclose(np.asarray(out), np.asarray(ref), rtol=1e-6, atol=1e-6)
    assert out.shape == x.shape and out.dtype == x.dtype

    # Case 2: bf16 with an element count that has no multiple-of-128 factorization
    # -> exercises the ragged fallback layout + masked-store path.
    xb = jax.random.normal(k2, (5, 3, 96), dtype=jnp.bfloat16)
    outb = jax.block_until_ready(learnable_logit_scaling(xb, log_logit_scale))
    refb = (jnp.minimum(jnp.exp(log_logit_scale), 100.0)
            * xb.astype(jnp.float32)).astype(jnp.bfloat16)
    np.testing.assert_allclose(np.asarray(outb, dtype=np.float32),
                               np.asarray(refb, dtype=np.float32),
                               rtol=2e-2, atol=1e-2)
    assert outb.shape == xb.shape and outb.dtype == xb.dtype

    # Case 3: degenerate empty input -> early-return path (no pallas_call).
    xe = jnp.zeros((0, 32), dtype=jnp.float32)
    oute = jax.block_until_ready(learnable_logit_scaling(xe, log_logit_scale))
    assert oute.shape == (0, 32) and oute.dtype == xe.dtype

    print("KERNEL_OK")
</pallas_src>

<mosaic_0001>
module attributes {stable_mosaic.version = 11 : i64} {
  func.func @_logit_scaling_kernel(%arg0: i32, %arg1: i32, %arg2: memref<1x1xf32, #tpu.memory_space<smem>>, %arg3: memref<8x2048xf32, #tpu.memory_space<vmem>>, %arg4: memref<8x2048xf32, #tpu.memory_space<vmem>>) attributes {dimension_semantics = [#tpu.dimension_semantics<parallel>, #tpu.dimension_semantics<parallel>], iteration_bounds = array<i64: 1, 1>, scalar_prefetch = 0 : i64, scratch_operands = 0 : i64, tpu.core_type = #tpu.core_type<tc>, window_params = [{transform_indices = @transform_0, window_bounds = array<i64: 1, 1>}, {transform_indices = @transform_1, window_bounds = array<i64: 8, 2048>}, {transform_indices = @transform_2, window_bounds = array<i64: 8, 2048>}]} {
    %c0 = arith.constant 0 : index
    %c0_0 = arith.constant 0 : index
    %0 = memref.load %arg2[%c0, %c0_0] : memref<1x1xf32, #tpu.memory_space<smem>>
    %c0_1 = arith.constant 0 : index
    %c0_2 = arith.constant 0 : index
    %1 = vector.load %arg3[%c0_1, %c0_2] : memref<8x2048xf32, #tpu.memory_space<vmem>>, vector<8x2048xf32>
    %2 = vector.broadcast %0 : f32 to vector<8x2048xf32>
    %3 = arith.mulf %2, %1 : vector<8x2048xf32>
    %c0_3 = arith.constant 0 : index
    %c0_4 = arith.constant 0 : index
    %4 = vector.load %arg4[%c0_3, %c0_4] : memref<8x2048xf32, #tpu.memory_space<vmem>>, vector<8x2048xf32>
    tpu.vector_store %arg4[%c0_3, %c0_4], %3 {strides = array<i32>} : memref<8x2048xf32, #tpu.memory_space<vmem>>, vector<8x2048xf32>,
    return
  }
  func.func @transform_0(%arg0: i32, %arg1: i32) -> (i32, i32) {
    %c0_i32 = arith.constant 0 : i32
    %c0_i32_0 = arith.constant 0 : i32
    %c0_i32_1 = arith.constant 0 : i32
    return %c0_i32, %c0_i32_0 : i32, i32
  }
  func.func @transform_1(%arg0: i32, %arg1: i32) -> (i32, i32) {
    %c0_i32 = arith.constant 0 : i32
    return %arg0, %arg1 : i32, i32
  }
  func.func @transform_2(%arg0: i32, %arg1: i32) -> (i32, i32) {
    %c0_i32 = arith.constant 0 : i32
    return %arg0, %arg1 : i32, i32
  }
}

</mosaic_0001>

<bundles_post_ra>
// kernel: tpu_custom_call.1
= control target key start
LH: loop header
LB: loop body
LE: loop exit
PB: predicated region body
PF: predicated region fallthrough
CT: control target
= control target key end

     0   :  { %8 = vsyncpa [#allocation4], 0  ;;  %s198_s0 = inlined_call_operand.<no memory space> [shape: f32[1,1], index: 0, kind: input, shape index: {}]   ;;  %s199_s1 = inlined_call_operand.hbm [shape: f32[2,2048], index: 1, kind: input, shape index: {}]   ;;  %s200_s2 = inlined_call_operand.hbm [shape: f32[2,2048], index: 2, kind: output, shape index: {}]  }
   0x1   :  { %9 = vsyncpa [#allocation5], 0 }
   0x2   :  { %16 = vsyncadd [#allocation4], 1536  ;;  %s146_s9 = smov [#allocation3]   ;;  %s98_s13 = scalar_lea.hbm %s199_s1, 512 }
   0x3   :  { %s17_s10 = sshll.u32 %s146_s9, 4  ;;  %p99_p0 = scmp.ne.s32.totalorder %s199_s1, %s98_s13  ;;  %s18_s10 = int_to_ptr.vmem [resolvable:$true] %s17_s10 }
   0x4   :  { %p102_p1 = scmp.lt.u32.totalorder %s98_s13, %s199_s1 }
   0x6   :  { %p104_p2 = pnand %p102_p1, %p99_p0 }
   0x8   :  { %107 = shalt.err (!%p104_p2)
}
   0x9   :  { %s108_s18 = scalar_lea.vmem %s18_s10, 512  ;;  %s112_s19 = scalar_lea.vmem %s18_s10, 2048 }
   0xa   :  { %p109_p3 = scmp.ne.s32.totalorder %s18_s10, %s108_s18  ;;  %p113_p4 = scmp.lt.s32.totalorder %s18_s10, %s18_s10 }
   0xb   :  { %p114_p5 = scmp.lt.s32.totalorder %s112_s19, %s108_s18 }
   0xd   :  { %p115_p6 = por %p114_p5, %p113_p4 }
   0xf   :  { %p116_p7 = pnand %p115_p6, %p109_p3 }
  0x11   :  { %119 = shalt.err (!%p116_p7)
}
  0x12   :  { %s147_s20 = smov 512   ;;  %s148_s21 = smov 32  }
  0x13   :  { %23 = dma.hbm_to_vmem [thread:$0]  %s199_s1, 512, %s18_s10, [#allocation4], %s147_s20, %s147_s20, %s148_s21  }
  0x14   :  { %142 = dma.done.wait [#allocation4], 2048  }
  0x15   :  { %143 = vsyncadd [#allocation4], 4294965248  ;;  %v44_v0 = vstv %s198_s0  ;;  %v28_v1 = vld [vmem:[#allocation3] sm:$0xff]  ;;  %v29_v2 = vld [vmem:[#allocation3 + $0x8] sm:$0xff] }
  0x16   :  { %v30_v3 = vld [vmem:[#allocation3 + $0x10] sm:$0xff]  ;;  %v45_v4 = vmul.f32 %v44_v0, %v28_v1  ;;  %v46_v5 = vmul.f32 %v44_v0, %v29_v2  ;;  %v31_v7 = vld [vmem:[#allocation3 + $0x18] sm:$0xff]  ;;  %v32_v8 = vld [vmem:[#allocation3 + $0x20] sm:$0xff] }
  0x17   :  { %v47_v6 = vmul.f32 %v44_v0, %v30_v3  ;;  %v33_v9 = vld [vmem:[#allocation3 + $0x28] sm:$0xff]  ;;  %v48_v10 = vmul.f32 %v44_v0, %v31_v7  ;;  %v49_v11 = vmul.f32 %v44_v0, %v32_v8  ;;  %v34_v13 = vld [vmem:[#allocation3 + $0x30] sm:$0xff]  ;;  %v35_v14 = vld [vmem:[#allocation3 + $0x38] sm:$0xff] }
  0x18   :  { %v50_v12 = vmul.f32 %v44_v0, %v33_v9  ;;  %v36_v15 = vld [vmem:[#allocation3 + $0x40] sm:$0xff]  ;;  %61 = vst [vmem:[#allocation6] sm:$0xff] %v45_v4  ;;  %62 = vst [vmem:[#allocation6 + $0x8] sm:$0xff] %v46_v5  ;;  %v51_v16 = vmul.f32 %v44_v0, %v34_v13  ;;  %v52_v17 = vmul.f32 %v44_v0, %v35_v14  ;;  %v37_v19 = vld [vmem:[#allocation3 + $0x48] sm:$0xff] }
  0x19   :  { %63 = vst [vmem:[#allocation6 + $0x10] sm:$0xff] %v47_v6  ;;  %v53_v18 = vmul.f32 %v44_v0, %v36_v15  ;;  %v38_v20 = vld [vmem:[#allocation3 + $0x50] sm:$0xff]  ;;  %v39_v21 = vld [vmem:[#allocation3 + $0x58] sm:$0xff]  ;;  %64 = vst [vmem:[#allocation6 + $0x18] sm:$0xff] %v48_v10  ;;  %v54_v22 = vmul.f32 %v44_v0, %v37_v19 }
  0x1a   :  { %65 = vst [vmem:[#allocation6 + $0x20] sm:$0xff] %v49_v11  ;;  %66 = vst [vmem:[#allocation6 + $0x28] sm:$0xff] %v50_v12  ;;  %v55_v23 = vmul.f32 %v44_v0, %v38_v20  ;;  %v56_v24 = vmul.f32 %v44_v0, %v39_v21  ;;  %v40_v25 = vld [vmem:[#allocation3 + $0x60] sm:$0xff]  ;;  %v41_v26 = vld [vmem:[#allocation3 + $0x68] sm:$0xff] }
  0x1b   :  { %v42_v27 = vld [vmem:[#allocation3 + $0x70] sm:$0xff]  ;;  %67 = vst [vmem:[#allocation6 + $0x30] sm:$0xff] %v51_v16  ;;  %68 = vst [vmem:[#allocation6 + $0x38] sm:$0xff] %v52_v17  ;;  %v57_v28 = vmul.f32 %v44_v0, %v40_v25  ;;  %v58_v29 = vmul.f32 %v44_v0, %v41_v26  ;;  %v43_v31 = vld [vmem:[#allocation3 + $0x78] sm:$0xff] }
  0x1c   :  { %69 = vst [vmem:[#allocation6 + $0x40] sm:$0xff] %v53_v18  ;;  %v59_v30 = vmul.f32 %v44_v0, %v42_v27  ;;  %70 = vst [vmem:[#allocation6 + $0x48] sm:$0xff] %v54_v22  ;;  %v60_v32 = vmul.f32 %v44_v0, %v43_v31 }
  0x1d   :  { %71 = vst [vmem:[#allocation6 + $0x50] sm:$0xff] %v55_v23  ;;  %72 = vst [vmem:[#allocation6 + $0x58] sm:$0xff] %v56_v24 }
  0x1e   :  { %73 = vst [vmem:[#allocation6 + $0x60] sm:$0xff] %v57_v28  ;;  %74 = vst [vmem:[#allocation6 + $0x68] sm:$0xff] %v58_v29 }
  0x1f   :  { %75 = vst [vmem:[#allocation6 + $0x70] sm:$0xff] %v59_v30  ;;  %76 = vst [vmem:[#allocation6 + $0x78] sm:$0xff] %v60_v32 }
  0x20   :  { %81 = vsyncadd [#allocation5], 1536  ;;  %s149_s0 = smov [#allocation6]  }
  0x21   :  { %s82_s1 = sshll.u32 %s149_s0, 4  ;;  %s83_s1 = int_to_ptr.vmem [resolvable:$true] %s82_s1 }
  0x22   :  { %s120_s26 = scalar_lea.vmem %s83_s1, 512  ;;  %s124_s27 = scalar_lea.vmem %s83_s1, 2048 }
  0x23   :  { %p121_p8 = scmp.ne.s32.totalorder %s83_s1, %s120_s26  ;;  %p125_p9 = scmp.lt.s32.totalorder %s83_s1, %s83_s1 }
  0x24   :  { %p126_p10 = scmp.lt.s32.totalorder %s124_s27, %s120_s26 }
  0x26   :  { %p127_p11 = por %p126_p10, %p125_p9 }
  0x28   :  { %p128_p12 = pnand %p127_p11, %p121_p8 }
  0x2a   :  { %131 = shalt.err (!%p128_p12)
}
  0x2b   :  { %s132_s30 = scalar_lea.hbm %s200_s2, 512 }
  0x2c   :  { %p133_p13 = scmp.ne.s32.totalorder %s200_s2, %s132_s30  ;;  %p136_p0 = scmp.lt.u32.totalorder %s132_s30, %s200_s2 }
  0x2e   :  { %p138_p1 = pnand %p136_p0, %p133_p13 }
  0x30   :  { %141 = shalt.err (!%p138_p1)
}
  0x31   :  { %88 = dma.vmem_to_hbm [thread:$0]  %s83_s1, 512, %s200_s2, [#allocation5], %s147_s20, %s147_s20, %s148_s21  }
  0x32   :  { %144 = dma.done.wait [#allocation5], 2048  }
  0x33   :  { %145 = vsyncadd [#allocation5], 4294965248 }
  0x34   :  { %92 = vsyncpa [#allocation4], 1 }
  0x35   :  { %93 = vsyncpa [#allocation5], 1 }

</bundles_post_ra>
